<compile_context>
chip_gen: v7x
topology: tpu7x:2x2x1
jax: 0.10.0
libtpu: 0.0.40
codegen_flags: <defaults>
</compile_context>

<pallas_src>
import functools
import math

import jax
import jax.numpy as jnp
from jax import lax
from jax.experimental import pallas as pl
from jax.experimental.pallas import tpu as pltpu

# Fixed temperature scale vector from the PyTorch module.
_TEMP_SCALE = jnp.array(
    [1.0, 1.4, 1.7, 2.0, 5.0, 10.0, 20.0, 40.0, 80.0, 160.0], dtype=jnp.float32
)
_NTEMP = 10


def _round_up(x, m):
    return ((x + m - 1) // m) * m


def _vmem_capacity_bytes():
    """Physical VMEM capacity of the current chip generation (fallback: 64 MiB)."""
    try:
        info = pltpu.get_tpu_info()
        for field in ("vmem_capacity_bytes", "vmem_bytes"):
            cap = getattr(info, field, None)
            if cap:
                return int(cap)
    except Exception:
        pass
    return 64 * 1024 * 1024  # conservative (v7x-sized) fallback


def _scaled_decoder_kernel(
    x_ref,      # (TM, ninp)          input tile (native dtype)
    w_ref,      # (ninp, nhid)        linear.weight.T   (compute dtype)
    b_ref,      # (1, nhid)           linear.bias       (f32)
    w12_ref,    # (nhid, nout_p+10)   [linear1 (lane-padded) | linear2].weight.T
    b12_ref,    # (1, nout_p+10)      [linear1 (lane-padded) | linear2].bias (f32)
    s_ref,      # (1, 10)             temperature scale vector (f32)
    o_ref,      # (TM, nout)          output tile (f32)
    *,
    compute_dtype,
    nout,
    nout_p,
):
    # NOTE: the trailing (ragged) grid tile pushes undefined rows through the
    # math below.  Every op here is strictly row-wise, so garbage rows never
    # contaminate valid rows, and Pallas drops them at the masked output store.
    # Do NOT add cross-row reductions without masking the tail first.
    x = x_ref[...].astype(compute_dtype)  # no-op if x is already compute_dtype

    # Linear(ninp -> nhid) + exact GELU (erf form, matching nn.GELU() default).
    h = jnp.dot(x, w_ref[...], preferred_element_type=jnp.float32) + b_ref[...]
    h = 0.5 * h * (1.0 + lax.erf(h * (1.0 / math.sqrt(2.0))))

    # Fused heads: one (nhid -> nout_p+10) matmul replaces linear1 and linear2.
    fused = (
        jnp.dot(h.astype(compute_dtype), w12_ref[...],
                preferred_element_type=jnp.float32)
        + b12_ref[...]
    )
    out = fused[:, :nout]                        # linear1(h), lane offset 0
    logits = fused[:, nout_p:nout_p + _NTEMP]    # linear2(h), 128-lane-aligned offset

    # temps = softmax(logits) @ s = sum(e*s)/sum(e).  Fold the softmax
    # normalization into the divide:  out / temps = out * sum(e) * 1/sum(e*s).
    logits = logits - jnp.max(logits, axis=-1, keepdims=True)
    e = jnp.exp(logits)
    ssum = jnp.sum(e, axis=-1, keepdims=True)                 # (TM, 1)
    wsum = jnp.sum(e * s_ref[...], axis=-1, keepdims=True)    # (TM, 1), >= ssum > 0
    o_ref[...] = out * (ssum * pl.reciprocal(wsum, approx=True))


def _choose_tile_m(n, ninp, nhid, nout, nheads_p, x_itemsize, w_itemsize,
                   x_needs_cast, vmem_budget):
    """Largest row tile (<=2048) that fits the VMEM budget, with >=2 grid steps
    for large n and MXU-friendly alignment."""
    # Resident parameters (single-buffered: pipeline_mode=pl.Buffered(1)).
    weight_bytes = (
        (ninp * nhid + nhid * nheads_p) * w_itemsize
        + (nhid + nheads_p + _NTEMP) * 4
    )
    # Rough per-row VMEM cost.
    per_row = (
        2 * ninp * x_itemsize        # x tile, double buffered
        + 2 * nout * 4               # out tile, double buffered
        + nhid * (4 + w_itemsize)    # h (f32) + compute-dtype copy
        + nheads_p * 4               # fused head result (f32)
        + 8 * _NTEMP * 4             # softmax temporaries
    )
    if x_needs_cast:
        per_row += ninp * w_itemsize  # in-kernel cast copy of x

    avail = vmem_budget - weight_bytes
    tm = avail // per_row if avail > 0 else 0
    tm = int(min(tm, 2048, n))

    # Guarantee >=2 (ideally >=4) grid steps when n is large enough: v7x's two
    # TensorCores only both get work if the ("parallel",) grid has >=2 steps,
    # and multiple steps let BlockSpec pipelining overlap DMA with compute.
    if n >= 4 * 256:
        tm = min(tm, pl.cdiv(n, 4))
    elif n >= 2 * 256:
        tm = min(tm, pl.cdiv(n, 2))

    if tm >= n:
        return n                     # single block == full array dims (always legal)
    if tm >= 256:
        tm = (tm // 256) * 256       # 256-align for the v6e/v7x 2x256x256 MXU
    else:
        # TODO(synk): if even a 128-row tile overflows VMEM (huge ninp*nhid),
        # a K-tiled grid axis with an accumulator scratch would be needed.
        tm = max((tm // 128) * 128, 128)
    return tm


def scaled_decoder_forward(x, params, *, tile_m=None, matmul_dtype=jnp.bfloat16):
    """x: (seq, batch, ninp) -> (seq, batch, nout) float32.

    x may be float32 or bfloat16; it is consumed in its native dtype (no
    wrapper-side cast / extra HBM pass).
    """
    w, b, w1, b1, w2, b2 = params
    ninp, nhid = w.shape
    nout = w1.shape[1]
    nout_p = _round_up(nout, 128)     # 128-lane-align the W1 half of the fused head
    nheads_p = nout_p + _NTEMP

    seq, batch, _ = x.shape
    n = seq * batch
    x2d = x.reshape(n, ninp)  # no padded copy: Pallas masks the ragged tail tile

    # Cast weights once; fuse the two output heads along the output axis with the
    # W1 block zero-padded to a 128-lane boundary so both in-kernel slices start
    # on a vreg boundary.
    w_c = w.astype(matmul_dtype)
    b_c = b.reshape(1, nhid).astype(jnp.float32)
    w1p = jnp.zeros((nhid, nout_p), w1.dtype).at[:, :nout].set(w1)
    b1p = jnp.zeros((nout_p,), b1.dtype).at[:nout].set(b1)
    w12 = jnp.concatenate([w1p, w2], axis=1).astype(matmul_dtype)      # (nhid, nout_p+10)
    b12 = jnp.concatenate([b1p, b2], axis=0).reshape(1, nheads_p).astype(jnp.float32)
    s_c = _TEMP_SCALE.reshape(1, _NTEMP)

    # Generation-derived VMEM budget: ~70% of capacity for tile sizing, ~75% as
    # the Mosaic scoped-VMEM limit (leaves headroom for internal scratch/spills).
    vmem_cap = _vmem_capacity_bytes()
    vmem_budget = (vmem_cap * 7) // 10
    vmem_limit = (vmem_cap * 3) // 4

    x_needs_cast = jnp.dtype(x2d.dtype) != jnp.dtype(matmul_dtype)
    if tile_m is None:
        tm = _choose_tile_m(
            n, ninp, nhid, nout, nheads_p,
            jnp.dtype(x2d.dtype).itemsize, jnp.dtype(matmul_dtype).itemsize,
            x_needs_cast, vmem_budget,
        )
    else:
        tm = min(tile_m, n)

    grid = (pl.cdiv(n, tm),)
    full = lambda i: (0, 0)  # whole-array block for grid-invariant parameters

    kernel = functools.partial(
        _scaled_decoder_kernel,
        compute_dtype=matmul_dtype, nout=nout, nout_p=nout_p,
    )

    def run(single_buffer_params):
        def pspec(shape):
            if single_buffer_params:
                # Weights never change across grid steps; the second buffer is waste.
                return pl.BlockSpec(shape, full, pipeline_mode=pl.Buffered(1))
            return pl.BlockSpec(shape, full)

        call = pl.pallas_call(
            kernel,
            out_shape=jax.ShapeDtypeStruct((n, nout), jnp.float32),
            grid_spec=pltpu.PrefetchScalarGridSpec(
                num_scalar_prefetch=0,
                grid=grid,
                in_specs=[
                    pl.BlockSpec((tm, ninp), lambda i: (i, 0)),   # x tile
                    pspec((ninp, nhid)),                          # W
                    pspec((1, nhid)),                             # b
                    pspec((nhid, nheads_p)),                      # [W1 (padded) | W2]
                    pspec((1, nheads_p)),                         # [b1 (padded) | b2]
                    pspec((1, _NTEMP)),                           # temperature scale
                ],
                out_specs=pl.BlockSpec((tm, nout), lambda i: (i, 0)),
            ),
            compiler_params=pltpu.CompilerParams(
                dimension_semantics=("parallel",),
                vmem_limit_bytes=int(vmem_limit),
            ),
        )
        return call(x2d, w_c, b_c, w12, b12, s_c)

    try:
        out2d = run(True)
    except Exception:
        # pl.Buffered(1) unsupported on this jax/libtpu combination: fall back to
        # default double buffering of the parameter blocks.
        out2d = run(False)

    return out2d.reshape(seq, batch, nout)


def init_params(key, ninp, nhid, nout):
    """Deterministic init matching nn.Linear default (U[-1/sqrt(fan_in), +...]).

    Weights are stored already transposed: (in_features, out_features).
    """
    ks = jax.random.split(key, 6)

    def lin(kw, kb, fan_in, fan_out):
        bound = 1.0 / math.sqrt(fan_in)
        w = jax.random.uniform(kw, (fan_in, fan_out), jnp.float32, -bound, bound)
        b = jax.random.uniform(kb, (fan_out,), jnp.float32, -bound, bound)
        return w, b

    w, b = lin(ks[0], ks[1], ninp, nhid)      # linear
    w1, b1 = lin(ks[2], ks[3], nhid, nout)    # linear1
    w2, b2 = lin(ks[4], ks[5], nhid, 10)      # linear2
    return (w, b, w1, b1, w2, b2)


def _reference_forward(x, params):
    """Pure-JAX f32 reference matching the PyTorch module exactly."""
    w, b, w1, b1, w2, b2 = params
    h = x @ w + b
    h = 0.5 * h * (1.0 + lax.erf(h / math.sqrt(2.0)))
    p = jax.nn.softmax(h @ w2 + b2, axis=-1)
    temps = p @ _TEMP_SCALE
    return (h @ w1 + b1) / temps[..., None]


if __name__ == "__main__":
    ninp, nhid, nout = 32, 64, 8
    seq, batch = 8, 2

    key = jax.random.PRNGKey(0)
    k_x, k_p = jax.random.split(key)
    x = jax.random.normal(k_x, (seq, batch, ninp), dtype=jnp.float32)
    params = init_params(k_p, ninp, nhid, nout)

    ref = _reference_forward(x, params)

    # Default (bf16 matmul) path: compare against f32 reference with a tolerance
    # appropriate for bf16 operands.
    out = scaled_decoder_forward(x, params)
    out = jax.block_until_ready(out)
    assert out.shape == (seq, batch, nout)
    err = float(jnp.max(jnp.abs(out - ref)) / (jnp.max(jnp.abs(ref)) + 1e-6))
    assert err < 2e-2, f"bf16 path: normalized max error {err:.3e} vs f32 reference"

    # f32 matmul path sanity check (only the single approx-reciprocal deviation remains).
    out_f32 = scaled_decoder_forward(x, params, matmul_dtype=jnp.float32)
    out_f32 = jax.block_until_ready(out_f32)
    assert jnp.allclose(out_f32, ref, atol=2e-3, rtol=2e-3), "f32 path mismatch"

    print("KERNEL_OK")
</pallas_src>

<mosaic_0001>
module attributes {stable_mosaic.version = 11 : i64} {
  func.func @_scaled_decoder_kernel(%arg0: i32, %arg1: memref<16x32xf32, #tpu.memory_space<vmem>>, %arg2: memref<32x64xbf16, #tpu.memory_space<vmem>>, %arg3: memref<1x64xf32, #tpu.memory_space<vmem>>, %arg4: memref<64x138xbf16, #tpu.memory_space<vmem>>, %arg5: memref<1x138xf32, #tpu.memory_space<vmem>>, %arg6: memref<1x10xf32, #tpu.memory_space<vmem>>, %arg7: memref<16x8xf32, #tpu.memory_space<vmem>>) attributes {dimension_semantics = [#tpu.dimension_semantics<parallel>], iteration_bounds = array<i64: 1>, scalar_prefetch = 0 : i64, scratch_operands = 0 : i64, tpu.core_type = #tpu.core_type<tc>, window_params = [{transform_indices = @transform_0, window_bounds = array<i64: 16, 32>}, {pipeline_mode = #tpu.pipeline_mode<synchronous>, transform_indices = @transform_1, window_bounds = array<i64: 32, 64>}, {pipeline_mode = #tpu.pipeline_mode<synchronous>, transform_indices = @transform_2, window_bounds = array<i64: 1, 64>}, {pipeline_mode = #tpu.pipeline_mode<synchronous>, transform_indices = @transform_3, window_bounds = array<i64: 64, 138>}, {pipeline_mode = #tpu.pipeline_mode<synchronous>, transform_indices = @transform_4, window_bounds = array<i64: 1, 138>}, {pipeline_mode = #tpu.pipeline_mode<synchronous>, transform_indices = @transform_5, window_bounds = array<i64: 1, 10>}, {transform_indices = @transform_6, window_bounds = array<i64: 16, 8>}]} {
    %c0 = arith.constant 0 : index
    %c0_0 = arith.constant 0 : index
    %0 = vector.load %arg1[%c0, %c0_0] : memref<16x32xf32, #tpu.memory_space<vmem>>, vector<16x32xf32>
    %1 = arith.truncf %0 : vector<16x32xf32> to vector<16x32xbf16>
    %c0_1 = arith.constant 0 : index
    %c0_2 = arith.constant 0 : index
    %2 = vector.load %arg2[%c0_1, %c0_2] : memref<32x64xbf16, #tpu.memory_space<vmem>>, vector<32x64xbf16>
    %cst = arith.constant dense<0.000000e+00> : vector<16x64xf32>
    %3 = tpu.matmul %1, %2, %cst {dimension_numbers = #tpu.dot_dimension_numbers<[1], [0], [0], [1], [0, 0, 1, 1], [], []>} : vector<16x32xbf16>, vector<32x64xbf16>, vector<16x64xf32> -> vector<16x64xf32>
    %c0_3 = arith.constant 0 : index
    %c0_4 = arith.constant 0 : index
    %4 = vector.load %arg3[%c0_3, %c0_4] : memref<1x64xf32, #tpu.memory_space<vmem>>, vector<1x64xf32>
    %5 = vector.broadcast %4 : vector<1x64xf32> to vector<16x64xf32>
    %6 = arith.addf %3, %5 : vector<16x64xf32>
    %cst_5 = arith.constant 5.000000e-01 : f32
    %7 = vector.broadcast %cst_5 : f32 to vector<16x64xf32>
    %8 = arith.mulf %7, %6 : vector<16x64xf32>
    %cst_6 = arith.constant 0.707106769 : f32
    %9 = vector.broadcast %cst_6 : f32 to vector<16x64xf32>
    %10 = arith.mulf %6, %9 : vector<16x64xf32>
    %11 = math.erf %10 : vector<16x64xf32>
    %cst_7 = arith.constant 1.000000e+00 : f32
    %12 = vector.broadcast %cst_7 : f32 to vector<16x64xf32>
    %13 = arith.addf %12, %11 : vector<16x64xf32>
    %14 = arith.mulf %8, %13 : vector<16x64xf32>
    %15 = arith.truncf %14 : vector<16x64xf32> to vector<16x64xbf16>
    %c0_8 = arith.constant 0 : index
    %c0_9 = arith.constant 0 : index
    %16 = vector.load %arg4[%c0_8, %c0_9] : memref<64x138xbf16, #tpu.memory_space<vmem>>, vector<64x138xbf16>
    %cst_10 = arith.constant dense<0.000000e+00> : vector<16x138xf32>
    %17 = tpu.matmul %15, %16, %cst_10 {dimension_numbers = #tpu.dot_dimension_numbers<[1], [0], [0], [1], [0, 0, 1, 1], [], []>} : vector<16x64xbf16>, vector<64x138xbf16>, vector<16x138xf32> -> vector<16x138xf32>
    %c0_11 = arith.constant 0 : index
    %c0_12 = arith.constant 0 : index
    %18 = vector.load %arg5[%c0_11, %c0_12] : memref<1x138xf32, #tpu.memory_space<vmem>>, vector<1x138xf32>
    %19 = vector.broadcast %18 : vector<1x138xf32> to vector<16x138xf32>
    %20 = arith.addf %17, %19 : vector<16x138xf32>
    %21 = vector.extract_strided_slice %20 {offsets = [0, 0], sizes = [16, 8], strides = [1, 1]} : vector<16x138xf32> to vector<16x8xf32>
    %22 = vector.extract_strided_slice %20 {offsets = [0, 128], sizes = [16, 10], strides = [1, 1]} : vector<16x138xf32> to vector<16x10xf32>
    %cst_13 = arith.constant dense<0xFF800000> : vector<16xf32>
    %23 = vector.multi_reduction <maximumf>, %22, %cst_13 [1] : vector<16x10xf32> to vector<16xf32>
    %24 = vector.shape_cast %23 : vector<16xf32> to vector<16x1xf32>
    %25 = vector.broadcast %24 : vector<16x1xf32> to vector<16x10xf32>
    %26 = arith.subf %22, %25 : vector<16x10xf32>
    %27 = math.exp %26 : vector<16x10xf32>
    %cst_14 = arith.constant dense<0.000000e+00> : vector<16xf32>
    %28 = vector.multi_reduction <add>, %27, %cst_14 [1] : vector<16x10xf32> to vector<16xf32>
    %29 = vector.shape_cast %28 : vector<16xf32> to vector<16x1xf32>
    %c0_15 = arith.constant 0 : index
    %c0_16 = arith.constant 0 : index
    %30 = vector.load %arg6[%c0_15, %c0_16] : memref<1x10xf32, #tpu.memory_space<vmem>>, vector<1x10xf32>
    %31 = vector.broadcast %30 : vector<1x10xf32> to vector<16x10xf32>
    %32 = arith.mulf %27, %31 : vector<16x10xf32>
    %cst_17 = arith.constant dense<0.000000e+00> : vector<16xf32>
    %33 = vector.multi_reduction <add>, %32, %cst_17 [1] : vector<16x10xf32> to vector<16xf32>
    %34 = vector.shape_cast %33 : vector<16xf32> to vector<16x1xf32>
    %35 = tpu.reciprocal %34 {approx = true} : vector<16x1xf32> -> vector<16x1xf32>
    %36 = arith.mulf %29, %35 : vector<16x1xf32>
    %37 = vector.broadcast %36 : vector<16x1xf32> to vector<16x8xf32>
    %38 = arith.mulf %21, %37 : vector<16x8xf32>
    %c0_18 = arith.constant 0 : index
    %c0_19 = arith.constant 0 : index
    %39 = vector.load %arg7[%c0_18, %c0_19] : memref<16x8xf32, #tpu.memory_space<vmem>>, vector<16x8xf32>
    tpu.vector_store %arg7[%c0_18, %c0_19], %38 {strides = array<i32>} : memref<16x8xf32, #tpu.memory_space<vmem>>, vector<16x8xf32>,
    return
  }
  func.func @transform_0(%arg0: i32) -> (i32, i32) {
    %c0_i32 = arith.constant 0 : i32
    %c0_i32_0 = arith.constant 0 : i32
    return %arg0, %c0_i32 : i32, i32
  }
  func.func @transform_1(%arg0: i32) -> (i32, i32) {
    %c0_i32 = arith.constant 0 : i32
    %c0_i32_0 = arith.constant 0 : i32
    %c0_i32_1 = arith.constant 0 : i32
    return %c0_i32, %c0_i32_0 : i32, i32
  }
  func.func @transform_2(%arg0: i32) -> (i32, i32) {
    %c0_i32 = arith.constant 0 : i32
    %c0_i32_0 = arith.constant 0 : i32
    %c0_i32_1 = arith.constant 0 : i32
    return %c0_i32, %c0_i32_0 : i32, i32
  }
  func.func @transform_3(%arg0: i32) -> (i32, i32) {
    %c0_i32 = arith.constant 0 : i32
    %c0_i32_0 = arith.constant 0 : i32
    %c0_i32_1 = arith.constant 0 : i32
    return %c0_i32, %c0_i32_0 : i32, i32
  }
  func.func @transform_4(%arg0: i32) -> (i32, i32) {
    %c0_i32 = arith.constant 0 : i32
    %c0_i32_0 = arith.constant 0 : i32
    %c0_i32_1 = arith.constant 0 : i32
    return %c0_i32, %c0_i32_0 : i32, i32
  }
  func.func @transform_5(%arg0: i32) -> (i32, i32) {
    %c0_i32 = arith.constant 0 : i32
    %c0_i32_0 = arith.constant 0 : i32
    %c0_i32_1 = arith.constant 0 : i32
    return %c0_i32, %c0_i32_0 : i32, i32
  }
  func.func @transform_6(%arg0: i32) -> (i32, i32) {
    %c0_i32 = arith.constant 0 : i32
    %c0_i32_0 = arith.constant 0 : i32
    return %arg0, %c0_i32 : i32, i32
  }
}

module attributes {stable_mosaic.version = 11 : i64} {
  func.func @_scaled_decoder_kernel(%arg0: i32, %arg1: memref<16x32xf32, #tpu.memory_space<vmem>>, %arg2: memref<32x64xbf16, #tpu.memory_space<vmem>>, %arg3: memref<1x64xf32, #tpu.memory_space<vmem>>, %arg4: memref<64x138xbf16, #tpu.memory_space<vmem>>, %arg5: memref<1x138xf32, #tpu.memory_space<vmem>>, %arg6: memref<1x10xf32, #tpu.memory_space<vmem>>, %arg7: memref<16x8xf32, #tpu.memory_space<vmem>>) attributes {dimension_semantics = [#tpu.dimension_semantics<parallel>], iteration_bounds = array<i64: 1>, scalar_prefetch = 0 : i64, scratch_operands = 0 : i64, tpu.core_type = #tpu.core_type<tc>, window_params = [{transform_indices = @transform_0, window_bounds = array<i64: 16, 32>}, {pipeline_mode = #tpu.pipeline_mode<synchronous>, transform_indices = @transform_1, window_bounds = array<i64: 32, 64>}, {pipeline_mode = #tpu.pipeline_mode<synchronous>, transform_indices = @transform_2, window_bounds = array<i64: 1, 64>}, {pipeline_mode = #tpu.pipeline_mode<synchronous>, transform_indices = @transform_3, window_bounds = array<i64: 64, 138>}, {pipeline_mode = #tpu.pipeline_mode<synchronous>, transform_indices = @transform_4, window_bounds = array<i64: 1, 138>}, {pipeline_mode = #tpu.pipeline_mode<synchronous>, transform_indices = @transform_5, window_bounds = array<i64: 1, 10>}, {transform_indices = @transform_6, window_bounds = array<i64: 16, 8>}]} {
    %c0 = arith.constant 0 : index
    %c0_0 = arith.constant 0 : index
    %0 = vector.load %arg1[%c0, %c0_0] : memref<16x32xf32, #tpu.memory_space<vmem>>, vector<16x32xf32>
    %1 = arith.truncf %0 : vector<16x32xf32> to vector<16x32xbf16>
    %c0_1 = arith.constant 0 : index
    %c0_2 = arith.constant 0 : index
    %2 = vector.load %arg2[%c0_1, %c0_2] : memref<32x64xbf16, #tpu.memory_space<vmem>>, vector<32x64xbf16>
    %cst = arith.constant dense<0.000000e+00> : vector<16x64xf32>
    %3 = tpu.matmul %1, %2, %cst {dimension_numbers = #tpu.dot_dimension_numbers<[1], [0], [0], [1], [0, 0, 1, 1], [], []>} : vector<16x32xbf16>, vector<32x64xbf16>, vector<16x64xf32> -> vector<16x64xf32>
    %c0_3 = arith.constant 0 : index
    %c0_4 = arith.constant 0 : index
    %4 = vector.load %arg3[%c0_3, %c0_4] : memref<1x64xf32, #tpu.memory_space<vmem>>, vector<1x64xf32>
    %5 = vector.broadcast %4 : vector<1x64xf32> to vector<16x64xf32>
    %6 = arith.addf %3, %5 : vector<16x64xf32>
    %cst_5 = arith.constant 5.000000e-01 : f32
    %7 = vector.broadcast %cst_5 : f32 to vector<16x64xf32>
    %8 = arith.mulf %7, %6 : vector<16x64xf32>
    %cst_6 = arith.constant 0.707106769 : f32
    %9 = vector.broadcast %cst_6 : f32 to vector<16x64xf32>
    %10 = arith.mulf %6, %9 : vector<16x64xf32>
    %11 = math.erf %10 : vector<16x64xf32>
    %cst_7 = arith.constant 1.000000e+00 : f32
    %12 = vector.broadcast %cst_7 : f32 to vector<16x64xf32>
    %13 = arith.addf %12, %11 : vector<16x64xf32>
    %14 = arith.mulf %8, %13 : vector<16x64xf32>
    %15 = arith.truncf %14 : vector<16x64xf32> to vector<16x64xbf16>
    %c0_8 = arith.constant 0 : index
    %c0_9 = arith.constant 0 : index
    %16 = vector.load %arg4[%c0_8, %c0_9] : memref<64x138xbf16, #tpu.memory_space<vmem>>, vector<64x138xbf16>
    %cst_10 = arith.constant dense<0.000000e+00> : vector<16x138xf32>
    %17 = tpu.matmul %15, %16, %cst_10 {dimension_numbers = #tpu.dot_dimension_numbers<[1], [0], [0], [1], [0, 0, 1, 1], [], []>} : vector<16x64xbf16>, vector<64x138xbf16>, vector<16x138xf32> -> vector<16x138xf32>
    %c0_11 = arith.constant 0 : index
    %c0_12 = arith.constant 0 : index
    %18 = vector.load %arg5[%c0_11, %c0_12] : memref<1x138xf32, #tpu.memory_space<vmem>>, vector<1x138xf32>
    %19 = vector.broadcast %18 : vector<1x138xf32> to vector<16x138xf32>
    %20 = arith.addf %17, %19 : vector<16x138xf32>
    %21 = vector.extract_strided_slice %20 {offsets = [0, 0], sizes = [16, 8], strides = [1, 1]} : vector<16x138xf32> to vector<16x8xf32>
    %22 = vector.extract_strided_slice %20 {offsets = [0, 128], sizes = [16, 10], strides = [1, 1]} : vector<16x138xf32> to vector<16x10xf32>
    %cst_13 = arith.constant dense<0xFF800000> : vector<16xf32>
    %23 = vector.multi_reduction <maximumf>, %22, %cst_13 [1] : vector<16x10xf32> to vector<16xf32>
    %24 = vector.shape_cast %23 : vector<16xf32> to vector<16x1xf32>
    %25 = vector.broadcast %24 : vector<16x1xf32> to vector<16x10xf32>
    %26 = arith.subf %22, %25 : vector<16x10xf32>
    %27 = math.exp %26 : vector<16x10xf32>
    %cst_14 = arith.constant dense<0.000000e+00> : vector<16xf32>
    %28 = vector.multi_reduction <add>, %27, %cst_14 [1] : vector<16x10xf32> to vector<16xf32>
    %29 = vector.shape_cast %28 : vector<16xf32> to vector<16x1xf32>
    %c0_15 = arith.constant 0 : index
    %c0_16 = arith.constant 0 : index
    %30 = vector.load %arg6[%c0_15, %c0_16] : memref<1x10xf32, #tpu.memory_space<vmem>>, vector<1x10xf32>
    %31 = vector.broadcast %30 : vector<1x10xf32> to vector<16x10xf32>
    %32 = arith.mulf %27, %31 : vector<16x10xf32>
    %cst_17 = arith.constant dense<0.000000e+00> : vector<16xf32>
    %33 = vector.multi_reduction <add>, %32, %cst_17 [1] : vector<16x10xf32> to vector<16xf32>
    %34 = vector.shape_cast %33 : vector<16xf32> to vector<16x1xf32>
    %35 = tpu.reciprocal %34 {approx = true} : vector<16x1xf32> -> vector<16x1xf32>
    %36 = arith.mulf %29, %35 : vector<16x1xf32>
    %37 = vector.broadcast %36 : vector<16x1xf32> to vector<16x8xf32>
    %38 = arith.mulf %21, %37 : vector<16x8xf32>
    %c0_18 = arith.constant 0 : index
    %c0_19 = arith.constant 0 : index
    %39 = vector.load %arg7[%c0_18, %c0_19] : memref<16x8xf32, #tpu.memory_space<vmem>>, vector<16x8xf32>
    tpu.vector_store %arg7[%c0_18, %c0_19], %38 {strides = array<i32>} : memref<16x8xf32, #tpu.memory_space<vmem>>, vector<16x8xf32>,
    return
  }
  func.func @transform_0(%arg0: i32) -> (i32, i32) {
    %c0_i32 = arith.constant 0 : i32
    %c0_i32_0 = arith.constant 0 : i32
    return %arg0, %c0_i32 : i32, i32
  }
  func.func @transform_1(%arg0: i32) -> (i32, i32) {
    %c0_i32 = arith.constant 0 : i32
    %c0_i32_0 = arith.constant 0 : i32
    %c0_i32_1 = arith.constant 0 : i32
    return %c0_i32, %c0_i32_0 : i32, i32
  }
  func.func @transform_2(%arg0: i32) -> (i32, i32) {
    %c0_i32 = arith.constant 0 : i32
    %c0_i32_0 = arith.constant 0 : i32
    %c0_i32_1 = arith.constant 0 : i32
    return %c0_i32, %c0_i32_0 : i32, i32
  }
  func.func @transform_3(%arg0: i32) -> (i32, i32) {
    %c0_i32 = arith.constant 0 : i32
    %c0_i32_0 = arith.constant 0 : i32
    %c0_i32_1 = arith.constant 0 : i32
    return %c0_i32, %c0_i32_0 : i32, i32
  }
  func.func @transform_4(%arg0: i32) -> (i32, i32) {
    %c0_i32 = arith.constant 0 : i32
    %c0_i32_0 = arith.constant 0 : i32
    %c0_i32_1 = arith.constant 0 : i32
    return %c0_i32, %c0_i32_0 : i32, i32
  }
  func.func @transform_5(%arg0: i32) -> (i32, i32) {
    %c0_i32 = arith.constant 0 : i32
    %c0_i32_0 = arith.constant 0 : i32
    %c0_i32_1 = arith.constant 0 : i32
    return %c0_i32, %c0_i32_0 : i32, i32
  }
  func.func @transform_6(%arg0: i32) -> (i32, i32) {
    %c0_i32 = arith.constant 0 : i32
    %c0_i32_0 = arith.constant 0 : i32
    return %arg0, %c0_i32 : i32, i32
  }
}

</mosaic_0001>

<bundles_post_ra>
// kernel: tpu_custom_call.1
= control target key start
LH: loop header
LB: loop body
LE: loop exit
PB: predicated region body
PF: predicated region fallthrough
CT: control target
= control target key end

     0   :  { %11 = vsyncpa [#allocation3], 0  ;;  %s536_s0 = inlined_call_operand.hbm [shape: f32[16,32], index: 0, kind: input, shape index: {}]   ;;  %s537_s1 = inlined_call_operand.hbm [shape: bf16[32,64], index: 1, kind: input, shape index: {}]   ;;  %s538_s2 = inlined_call_operand.vmem [shape: f32[1,64], index: 2, kind: input, shape index: {}]   ;;  %s539_s3 = inlined_call_operand.hbm [shape: bf16[64,138], index: 3, kind: input, shape index: {}]   ;;  %s540_s4 = inlined_call_operand.vmem [shape: f32[1,138], index: 4, kind: input, shape index: {}]   ;;  %s541_s5 = inlined_call_operand.vmem [shape: f32[1,10], index: 5, kind: input, shape index: {}]   ;;  %s542_s6 = inlined_call_operand.vmem [shape: f32[16,8], index: 6, kind: output, shape index: {}]  }
   0x1   :  { %12 = vsyncpa [#allocation5], 0  ;;  %s434_s21 = smov [#allocation4]   ;;  %s364_s25 = scalar_lea.hbm %s537_s1, 256 }
   0x2   :  { %s30_s22 = sshll.u32 %s434_s21, 4  ;;  %p365_p0 = scmp.ne.s32.totalorder %s537_s1, %s364_s25  ;;  %s31_s22 = int_to_ptr.vmem [resolvable:$true] %s30_s22 }
   0x3   :  { %p368_p1 = scmp.lt.u32.totalorder %s364_s25, %s537_s1 }
   0x5   :  { %p370_p2 = pnand %p368_p1, %p365_p0 }
   0x7   :  { %373 = shalt.err (!%p370_p2)
}
   0x8   :  { %s374_s30 = scalar_lea.vmem %s31_s22, 256  ;;  %p379_p4 = scmp.lt.s32.totalorder %s31_s22, %s31_s22 }
   0x9   :  { %p375_p3 = scmp.ne.s32.totalorder %s31_s22, %s374_s30  ;;  %p380_p5 = scmp.lt.s32.totalorder %s374_s30, %s374_s30 }
   0xb   :  { %p381_p6 = por %p380_p5, %p379_p4 }
   0xd   :  { %p382_p7 = pnand %p381_p6, %p375_p3 }
   0xf   :  { %385 = shalt.err (!%p382_p7)
}
  0x10   :  { %s435_s7 = smov 64   ;;  %s436_s8 = smov 4  }
  0x11   :  { %36 = dma.hbm_to_vmem [thread:$0]  %s537_s1, 256, %s31_s22, [#allocation5], %s435_s7, %s435_s7, %s436_s8  }
  0x12   :  { %s437_s11 = smov [#allocation2]   ;;  %s386_s15 = scalar_lea.hbm %s536_s0, 256 }
  0x13   :  { %s18_s12 = sshll.u32 %s437_s11, 4  ;;  %p387_p8 = scmp.ne.s32.totalorder %s536_s0, %s386_s15  ;;  %s19_s12 = int_to_ptr.vmem [resolvable:$true] %s18_s12 }
  0x14   :  { %p390_p9 = scmp.lt.u32.totalorder %s386_s15, %s536_s0 }
  0x16   :  { %p392_p10 = pnand %p390_p9, %p387_p8 }
  0x18   :  { %395 = shalt.err (!%p392_p10)
}
  0x19   :  { %s396_s20 = scalar_lea.vmem %s19_s12, 256  ;;  %p401_p12 = scmp.lt.s32.totalorder %s19_s12, %s19_s12 }
  0x1a   :  { %p397_p11 = scmp.ne.s32.totalorder %s19_s12, %s396_s20  ;;  %p402_p13 = scmp.lt.s32.totalorder %s396_s20, %s396_s20 }
  0x1c   :  { %p403_p0 = por %p402_p13, %p401_p12 }
  0x1e   :  { %p404_p1 = pnand %p403_p0, %p397_p11 }
  0x20   :  { %407 = shalt.err (!%p404_p1)
}
  0x21   :  { %s438_s1 = smov 128   ;;  %s439_s21 = smov 8  }
  0x22   :  { %24 = dma.hbm_to_vmem [thread:$0]  %s536_s0, 256, %s19_s12, [#allocation3], %s438_s1, %s438_s1, %s439_s21  }
  0x23   :  { %s440_s24 = smov [#allocation6]   ;;  %s408_s28 = scalar_lea.hbm %s539_s3, 1024 }
  0x24   :  { %s44_s25 = sshll.u32 %s440_s24, 4  ;;  %p409_p2 = scmp.ne.s32.totalorder %s539_s3, %s408_s28  ;;  %s45_s25 = int_to_ptr.vmem [resolvable:$true] %s44_s25 }
  0x25   :  { %p412_p3 = scmp.lt.u32.totalorder %s408_s28, %s539_s3 }
  0x27   :  { %p414_p4 = pnand %p412_p3, %p409_p2 }
  0x29   :  { %417 = shalt.err (!%p414_p4)
}
  0x2a   :  { %s418_s9 = scalar_lea.vmem %s45_s25, 1024  ;;  %p423_p6 = scmp.lt.s32.totalorder %s45_s25, %s45_s25 }
  0x2b   :  { %p419_p5 = scmp.ne.s32.totalorder %s45_s25, %s418_s9  ;;  %p424_p7 = scmp.lt.s32.totalorder %s418_s9, %s418_s9 }
  0x2d   :  { %p425_p8 = por %p424_p7, %p423_p6 }
  0x2f   :  { %p426_p9 = pnand %p425_p8, %p419_p5 }
  0x31   :  { %429 = shalt.err (!%p426_p9)
}
  0x32   :  { %50 = dma.hbm_to_vmem [thread:$0]  %s539_s3, 1024, %s45_s25, [#allocation5], %s438_s1, %s438_s1, %s439_s21  }
  0x33   :  { %430 = dma.done.wait [#allocation3], 256  }
  0x34   :  { %431 = vsyncadd [#allocation3], 4294967040 }
  0x35   :  { %432 = dma.done.wait [#allocation5], 1280  }
  0x36   :  { %433 = vsyncadd [#allocation5], 4294966016  ;;  %v441_v0 = vmov 0.0   ;;  %vm442_vm0 = vmmov 0   ;;  %v338_v1 = vld [vmem:[#allocation4] sm:$0xff]   ;;  %v339_v2 = vld [vmem:[#allocation4 + $0x8] sm:$0xff]   ;;  %v157_v33 = vlaneseq }
  0x37   :  { %320 = vmatprep.subr.bf16.mxu0 %v441_v0  ;;  %324 = vmatprep.mubr.msk.bf16.mxu0 %vm442_vm0, %v441_v0  ;;  %v65_v3 = vld [vmem:[#allocation2] sm:$0xff]  ;;  %v66_v4 = vld [vmem:[#allocation2 + $0x8] sm:$0xff]  ;;  %vm91_vm1 = vcmask 261120   ;;  %v343_v8 = vld [vmem:[#allocation6 + $0x14] ss:$8 sps:$4 sm:$0xff]   ;;  %v443_v14 = vmov 0  }
  0x38   :  { %321 = vmatpush3.bf16.msra.mxu0 %v338_v1  ;;  %v67_v5 = vpack.c.bf16 %v66_v4, %v65_v3  ;;  %v340_v6 = vld [vmem:[#allocation6 + $0x4] ss:$8 sps:$4 sm:$0xff]   ;;  %v342_v7 = vld [vmem:[#allocation6] ss:$8 sps:$4 sm:$0xff]   ;;  %v345_v9 = vld [vmem:[#allocation6 + $0x10] ss:$8 sps:$4 sm:$0xff]   ;;  %243 = vmatprep.mubr.bf16.mxu1 %v443_v14 }
  0x39   :  { %322 = vmatprep.subr.bf16.mxu0 %v441_v0  ;;  %211 = vmatprep.subr.bf16.mxu1 %v340_v6  ;;  %v346_v10 = vld [vmem:[#allocation6 + $0x24] ss:$8 sps:$4 sm:$0xff]   ;;  %v348_v11 = vld [vmem:[#allocation6 + $0x20] ss:$8 sps:$4 sm:$0xff]   ;;  %v349_v12 = vld [vmem:[#allocation6 + $0x34] ss:$8 sps:$4 sm:$0xff]  }
  0x3a   :  { %212 = vmatpush1.bf16.msra.mxu1 %v342_v7  ;;  %v351_v13 = vld [vmem:[#allocation6 + $0x30] ss:$8 sps:$4 sm:$0xff]   ;;  %v303_v15 = vld [vmem:[%s538_s2] ss:$0 sm:$0xff]  ;;  %vm207_vm2 = vcmask 523264   ;;  %v158_v34 = vshrl.u32 %v157_v33, 7 }
  0x3b   :  { %213 = vmatprep.subr.bf16.mxu1 %v343_v8  ;;  %v155_v36 = vld [vmem:[%s540_s4] sm:$0x3]  ;;  %vm254_vm3 = vcmask 80896   ;;  %vm294_vm4 = vcmask 64512  }
  0x3c   :  { %323 = vmatpush3.bf16.msra.mxu0 %v339_v2  ;;  %v163_v35 = vsub.s32 1, %v158_v34  ;;  %v316_v52 = vld [vmem:[%s541_s5] ss:$0 sm:$0xff]  ;;  %v159_v62 = vsub.s32 0, %v158_v34 }
  0x3e   :  { %214 = vmatpush1.bf16.msra.mxu1 %v345_v9  ;;  %v164_v37 = vrot.slane %v155_v36, %v163_v35  ;;  %v160_v0 = vrot.slane %v155_v36, %v159_v62 }
  0x3f   :  { %325 = vmatmul.mubr.msk.bf16.vlgmr.msra.gmra.mrb[0].mxu0 %vm91_vm1, %v67_v5  ;;  %215 = vmatprep.subr.bf16.mxu1 %v346_v10 }
  0x42   :  { %216 = vmatpush1.bf16.msra.mxu1 %v348_v11 }
  0x43   :  { %217 = vmatprep.subr.bf16.mxu1 %v349_v12 }
  0x46   :  { %218 = vmatpush1.bf16.msra.mxu1 %v351_v13 }
 0x112   :  { %v129_v16 = vpop.f32.mrb[0].mxu0 }
 0x113   :  { %v130_v17 = vadd.f32 %v303_v15, %v129_v16  ;;  %v326_v18 = vpop.f32.mrb[1].mxu0 }
 0x114   :  { %v132_v19 = vpop.f32.mrb[2].mxu0 }
 0x115   :  { %v138_v20 = vmul.f32 0.70710677, %v130_v17  ;;  %v133_v21 = vadd.f32 %v303_v15, %v132_v19  ;;  %v327_v22 = vpop.f32.mrb[3].mxu0  ;;  %v136_v27 = vmul.f32 0.5, %v130_v17 }
 0x117   :  { %352 = verf.f32 %v138_v20  ;;  %v139_v23 = vmul.f32 0.70710677, %v133_v21  ;;  %v137_v28 = vmul.f32 0.5, %v133_v21 }
 0x119   :  { %354 = verf.f32 %v139_v23 }
 0x121   :  { %v353_v24 = vpop.eup %352 }
 0x122   :  { %v142_v25 = vadd.f32 1.0, %v353_v24 }
 0x123   :  { %v355_v26 = vpop.eup %354 }
 0x124   :  { %v143_v29 = vadd.f32 1.0, %v355_v26  ;;  %v144_v30 = vmul.f32 %v142_v25, %v136_v27 }
 0x126   :  { %v145_v31 = vmul.f32 %v143_v29, %v137_v28 }
 0x128   :  { %v146_v32 = vpack.c.bf16 %v145_v31, %v144_v30 }
 0x12a   :  { %315 = vmatmul.mubr.msk.bf16.vlgmr.msra.gmra.mrb[0].mxu1 %vm207_vm2, %v146_v32 }
 0x1fd   :  { %v245_v38 = vpop.f32.mrb[0].mxu1 }
 0x1fe   :  { %v247_v39 = vpop.f32.mrb[1].mxu1  ;;  %v246_v3 = vadd.f32 %v245_v38, %v160_v0 }
 0x1ff   :  { %v248_v40 = vadd.f32 %v247_v39, %v164_v37  ;;  %v249_v41 = vpop.f32.mrb[2].mxu1 }
 0x200   :  { %v251_v42 = vpop.f32.mrb[3].mxu1  ;;  %v250_v8 = vadd.f32 %v249_v41, %v160_v0 }
 0x201   :  { %v252_v43 = vadd.f32 %v251_v42, %v164_v37  ;;  %v255_v44 = vsel %vm254_vm3, %v248_v40, -inf }
 0x202   :  { %256 = vmax.xlane.f32.xlu0 %v255_v44 }
 0x203   :  { %v258_v45 = vsel %vm254_vm3, %v252_v43, -inf }
 0x206   :  { %259 = vmax.xlane.f32.xlu0 %v258_v45 }
 0x28f   :  { %v257_v46 = vpop.xlane.xlu0 %256 }
 0x290   :  { %v261_v47 = vsub.f32 %v248_v40, %v257_v46 }
 0x292   :  { %v263_v48 = vmul.f32 1.442695, %v261_v47 }
 0x293   :  { %v260_v49 = vpop.xlane.xlu0 %259 }
 0x294   :  { %356 = vpow2.f32 %v263_v48  ;;  %v262_v50 = vsub.f32 %v252_v43, %v260_v49 }
 0x296   :  { %v265_v51 = vmul.f32 1.442695, %v262_v50 }
 0x298   :  { %358 = vpow2.f32 %v265_v51 }
 0x29e   :  { %v357_v53 = vpop.eup %356 }
 0x29f   :  { %v267_v54 = vsel %vm254_vm3, %v357_v53, 0.0  ;;  %v280_v55 = vmul.f32 %v357_v53, %v316_v52 }
 0x2a0   :  { %268 = vadd.xlane.f32.xlu0 %v267_v54 }
 0x2a1   :  { %v282_v56 = vsel %vm254_vm3, %v280_v55, 0.0 }
 0x2a2   :  { %v359_v57 = vpop.eup %358  ;;  %283 = vadd.xlane.f32.xlu1 %v282_v56 }
 0x2a3   :  { %v281_v58 = vmul.f32 %v359_v57, %v316_v52  ;;  %v270_v60 = vsel %vm254_vm3, %v359_v57, 0.0 }
 0x2a5   :  { %v285_v59 = vsel %vm254_vm3, %v281_v58, 0.0 }
 0x2a6   :  { %286 = vadd.xlane.f32.xlu1 %v285_v59 }
 0x2aa   :  { %271 = vadd.xlane.f32.xlu1 %v270_v60 }
 0x32d   :  { %v269_v2 = vpop.xlane.xlu0 %268 }
 0x32f   :  { %v284_v61 = vpop.xlane.xlu1 %283 }
 0x330   :  { %360 = vrcp.f32 %v284_v61 }
 0x333   :  { %v287_v63 = vpop.xlane.xlu1 %286 }
 0x334   :  { %362 = vrcp.f32 %v287_v63 }
 0x337   :  { %v272_v7 = vpop.xlane.xlu1 %271 }
 0x33a   :  { %v361_v1 = vpop.eup %360 }
 0x33b   :  { %v290_v4 = vmul.f32 %v361_v1, %v269_v2 }
 0x33d   :  { %v292_v5 = vmul.f32 %v290_v4, %v246_v3 }
 0x33e   :  { %v363_v6 = vpop.eup %362 }
 0x33f   :  { %v291_v9 = vmul.f32 %v363_v6, %v272_v7  ;;  %295 = vst.msk [vmem:[%s542_s6] sm:$0xff] %vm294_vm4, %v292_v5 }
 0x341   :  { %v293_v10 = vmul.f32 %v291_v9, %v250_v8 }
 0x343   :  { %296 = vst.msk [vmem:[%s542_s6 + $0x8] sm:$0xff] %vm294_vm4, %v293_v10 }
 0x344   :  { %301 = vsyncpa [#allocation3], 1 }
 0x345   :  { %302 = vsyncpa [#allocation5], 1 }

// kernel: tpu_custom_call.1
= control target key start
LH: loop header
LB: loop body
LE: loop exit
PB: predicated region body
PF: predicated region fallthrough
CT: control target
= control target key end

     0   :  { %11 = vsyncpa [#allocation3], 0  ;;  %s536_s0 = inlined_call_operand.hbm [shape: f32[16,32], index: 0, kind: input, shape index: {}]   ;;  %s537_s1 = inlined_call_operand.hbm [shape: bf16[32,64], index: 1, kind: input, shape index: {}]   ;;  %s538_s2 = inlined_call_operand.vmem [shape: f32[1,64], index: 2, kind: input, shape index: {}]   ;;  %s539_s3 = inlined_call_operand.hbm [shape: bf16[64,138], index: 3, kind: input, shape index: {}]   ;;  %s540_s4 = inlined_call_operand.vmem [shape: f32[1,138], index: 4, kind: input, shape index: {}]   ;;  %s541_s5 = inlined_call_operand.vmem [shape: f32[1,10], index: 5, kind: input, shape index: {}]   ;;  %s542_s6 = inlined_call_operand.vmem [shape: f32[16,8], index: 6, kind: output, shape index: {}]  }
   0x1   :  { %12 = vsyncpa [#allocation5], 0  ;;  %s434_s21 = smov [#allocation4]   ;;  %s364_s25 = scalar_lea.hbm %s537_s1, 256 }
   0x2   :  { %s30_s22 = sshll.u32 %s434_s21, 4  ;;  %p365_p0 = scmp.ne.s32.totalorder %s537_s1, %s364_s25  ;;  %s31_s22 = int_to_ptr.vmem [resolvable:$true] %s30_s22 }
   0x3   :  { %p368_p1 = scmp.lt.u32.totalorder %s364_s25, %s537_s1 }
   0x5   :  { %p370_p2 = pnand %p368_p1, %p365_p0 }
   0x7   :  { %373 = shalt.err (!%p370_p2)
}
   0x8   :  { %s374_s30 = scalar_lea.vmem %s31_s22, 256  ;;  %p379_p4 = scmp.lt.s32.totalorder %s31_s22, %s31_s22 }
   0x9   :  { %p375_p3 = scmp.ne.s32.totalorder %s31_s22, %s374_s30  ;;  %p380_p5 = scmp.lt.s32.totalorder %s374_s30, %s374_s30 }
   0xb   :  { %p381_p6 = por %p380_p5, %p379_p4 }
   0xd   :  { %p382_p7 = pnand %p381_p6, %p375_p3 }
   0xf   :  { %385 = shalt.err (!%p382_p7)
}
  0x10   :  { %s435_s7 = smov 64   ;;  %s436_s8 = smov 4  }
  0x11   :  { %36 = dma.hbm_to_vmem [thread:$0]  %s537_s1, 256, %s31_s22, [#allocation5], %s435_s7, %s435_s7, %s436_s8  }
  0x12   :  { %s437_s11 = smov [#allocation2]   ;;  %s386_s15 = scalar_lea.hbm %s536_s0, 256 }
  0x13   :  { %s18_s12 = sshll.u32 %s437_s11, 4  ;;  %p387_p8 = scmp.ne.s32.totalorder %s536_s0, %s386_s15  ;;  %s19_s12 = int_to_ptr.vmem [resolvable:$true] %s18_s12 }
  0x14   :  { %p390_p9 = scmp.lt.u32.totalorder %s386_s15, %s536_s0 }
  0x16   :  { %p392_p10 = pnand %p390_p9, %p387_p8 }
  0x18   :  { %395 = shalt.err (!%p392_p10)
}
  0x19   :  { %s396_s20 = scalar_lea.vmem %s19_s12, 256  ;;  %p401_p12 = scmp.lt.s32.totalorder %s19_s12, %s19_s12 }
  0x1a   :  { %p397_p11 = scmp.ne.s32.totalorder %s19_s12, %s396_s20  ;;  %p402_p13 = scmp.lt.s32.totalorder %s396_s20, %s396_s20 }
  0x1c   :  { %p403_p0 = por %p402_p13, %p401_p12 }
  0x1e   :  { %p404_p1 = pnand %p403_p0, %p397_p11 }
  0x20   :  { %407 = shalt.err (!%p404_p1)
}
  0x21   :  { %s438_s1 = smov 128   ;;  %s439_s21 = smov 8  }
  0x22   :  { %24 = dma.hbm_to_vmem [thread:$0]  %s536_s0, 256, %s19_s12, [#allocation3], %s438_s1, %s438_s1, %s439_s21  }
  0x23   :  { %s440_s24 = smov [#allocation6]   ;;  %s408_s28 = scalar_lea.hbm %s539_s3, 1024 }
  0x24   :  { %s44_s25 = sshll.u32 %s440_s24, 4  ;;  %p409_p2 = scmp.ne.s32.totalorder %s539_s3, %s408_s28  ;;  %s45_s25 = int_to_ptr.vmem [resolvable:$true] %s44_s25 }
  0x25   :  { %p412_p3 = scmp.lt.u32.totalorder %s408_s28, %s539_s3 }
  0x27   :  { %p414_p4 = pnand %p412_p3, %p409_p2 }
  0x29   :  { %417 = shalt.err (!%p414_p4)
}
  0x2a   :  { %s418_s9 = scalar_lea.vmem %s45_s25, 1024  ;;  %p423_p6 = scmp.lt.s32.totalorder %s45_s25, %s45_s25 }
  0x2b   :  { %p419_p5 = scmp.ne.s32.totalorder %s45_s25, %s418_s9  ;;  %p424_p7 = scmp.lt.s32.totalorder %s418_s9, %s418_s9 }
  0x2d   :  { %p425_p8 = por %p424_p7, %p423_p6 }
  0x2f   :  { %p426_p9 = pnand %p425_p8, %p419_p5 }
  0x31   :  { %429 = shalt.err (!%p426_p9)
}
  0x32   :  { %50 = dma.hbm_to_vmem [thread:$0]  %s539_s3, 1024, %s45_s25, [#allocation5], %s438_s1, %s438_s1, %s439_s21  }
  0x33   :  { %430 = dma.done.wait [#allocation3], 256  }
  0x34   :  { %431 = vsyncadd [#allocation3], 4294967040 }
  0x35   :  { %432 = dma.done.wait [#allocation5], 1280  }
  0x36   :  { %433 = vsyncadd [#allocation5], 4294966016  ;;  %v441_v0 = vmov 0.0   ;;  %vm442_vm0 = vmmov 0   ;;  %v338_v1 = vld [vmem:[#allocation4] sm:$0xff]   ;;  %v339_v2 = vld [vmem:[#allocation4 + $0x8] sm:$0xff]   ;;  %v157_v33 = vlaneseq }
  0x37   :  { %320 = vmatprep.subr.bf16.mxu0 %v441_v0  ;;  %324 = vmatprep.mubr.msk.bf16.mxu0 %vm442_vm0, %v441_v0  ;;  %v65_v3 = vld [vmem:[#allocation2] sm:$0xff]  ;;  %v66_v4 = vld [vmem:[#allocation2 + $0x8] sm:$0xff]  ;;  %vm91_vm1 = vcmask 261120   ;;  %v343_v8 = vld [vmem:[#allocation6 + $0x14] ss:$8 sps:$4 sm:$0xff]   ;;  %v443_v14 = vmov 0  }
  0x38   :  { %321 = vmatpush3.bf16.msra.mxu0 %v338_v1  ;;  %v67_v5 = vpack.c.bf16 %v66_v4, %v65_v3  ;;  %v340_v6 = vld [vmem:[#allocation6 + $0x4] ss:$8 sps:$4 sm:$0xff]   ;;  %v342_v7 = vld [vmem:[#allocation6] ss:$8 sps:$4 sm:$0xff]   ;;  %v345_v9 = vld [vmem:[#allocation6 + $0x10] ss:$8 sps:$4 sm:$0xff]   ;;  %243 = vmatprep.mubr.bf16.mxu1 %v443_v14 }
  0x39   :  { %322 = vmatprep.subr.bf16.mxu0 %v441_v0  ;;  %211 = vmatprep.subr.bf16.mxu1 %v340_v6  ;;  %v346_v10 = vld [vmem:[#allocation6 + $0x24] ss:$8 sps:$4 sm:$0xff]   ;;  %v348_v11 = vld [vmem:[#allocation6 + $0x20] ss:$8 sps:$4 sm:$0xff]   ;;  %v349_v12 = vld [vmem:[#allocation6 + $0x34] ss:$8 sps:$4 sm:$0xff]  }
  0x3a   :  { %212 = vmatpush1.bf16.msra.mxu1 %v342_v7  ;;  %v351_v13 = vld [vmem:[#allocation6 + $0x30] ss:$8 sps:$4 sm:$0xff]   ;;  %v303_v15 = vld [vmem:[%s538_s2] ss:$0 sm:$0xff]  ;;  %vm207_vm2 = vcmask 523264   ;;  %v158_v34 = vshrl.u32 %v157_v33, 7 }
  0x3b   :  { %213 = vmatprep.subr.bf16.mxu1 %v343_v8  ;;  %v155_v36 = vld [vmem:[%s540_s4] sm:$0x3]  ;;  %vm254_vm3 = vcmask 80896   ;;  %vm294_vm4 = vcmask 64512  }
  0x3c   :  { %323 = vmatpush3.bf16.msra.mxu0 %v339_v2  ;;  %v163_v35 = vsub.s32 1, %v158_v34  ;;  %v316_v52 = vld [vmem:[%s541_s5] ss:$0 sm:$0xff]  ;;  %v159_v62 = vsub.s32 0, %v158_v34 }
  0x3e   :  { %214 = vmatpush1.bf16.msra.mxu1 %v345_v9  ;;  %v164_v37 = vrot.slane %v155_v36, %v163_v35  ;;  %v160_v0 = vrot.slane %v155_v36, %v159_v62 }
  0x3f   :  { %325 = vmatmul.mubr.msk.bf16.vlgmr.msra.gmra.mrb[0].mxu0 %vm91_vm1, %v67_v5  ;;  %215 = vmatprep.subr.bf16.mxu1 %v346_v10 }
  0x42   :  { %216 = vmatpush1.bf16.msra.mxu1 %v348_v11 }
  0x43   :  { %217 = vmatprep.subr.bf16.mxu1 %v349_v12 }
  0x46   :  { %218 = vmatpush1.bf16.msra.mxu1 %v351_v13 }
 0x112   :  { %v129_v16 = vpop.f32.mrb[0].mxu0 }
 0x113   :  { %v130_v17 = vadd.f32 %v303_v15, %v129_v16  ;;  %v326_v18 = vpop.f32.mrb[1].mxu0 }
 0x114   :  { %v132_v19 = vpop.f32.mrb[2].mxu0 }
 0x115   :  { %v138_v20 = vmul.f32 0.70710677, %v130_v17  ;;  %v133_v21 = vadd.f32 %v303_v15, %v132_v19  ;;  %v327_v22 = vpop.f32.mrb[3].mxu0  ;;  %v136_v27 = vmul.f32 0.5, %v130_v17 }
 0x117   :  { %352 = verf.f32 %v138_v20  ;;  %v139_v23 = vmul.f32 0.70710677, %v133_v21  ;;  %v137_v28 = vmul.f32 0.5, %v133_v21 }
 0x119   :  { %354 = verf.f32 %v139_v23 }
 0x121   :  { %v353_v24 = vpop.eup %352 }
 0x122   :  { %v142_v25 = vadd.f32 1.0, %v353_v24 }
 0x123   :  { %v355_v26 = vpop.eup %354 }
 0x124   :  { %v143_v29 = vadd.f32 1.0, %v355_v26  ;;  %v144_v30 = vmul.f32 %v142_v25, %v136_v27 }
 0x126   :  { %v145_v31 = vmul.f32 %v143_v29, %v137_v28 }
 0x128   :  { %v146_v32 = vpack.c.bf16 %v145_v31, %v144_v30 }
 0x12a   :  { %315 = vmatmul.mubr.msk.bf16.vlgmr.msra.gmra.mrb[0].mxu1 %vm207_vm2, %v146_v32 }
 0x1fd   :  { %v245_v38 = vpop.f32.mrb[0].mxu1 }
 0x1fe   :  { %v247_v39 = vpop.f32.mrb[1].mxu1  ;;  %v246_v3 = vadd.f32 %v245_v38, %v160_v0 }
 0x1ff   :  { %v248_v40 = vadd.f32 %v247_v39, %v164_v37  ;;  %v249_v41 = vpop.f32.mrb[2].mxu1 }
 0x200   :  { %v251_v42 = vpop.f32.mrb[3].mxu1  ;;  %v250_v8 = vadd.f32 %v249_v41, %v160_v0 }
 0x201   :  { %v252_v43 = vadd.f32 %v251_v42, %v164_v37  ;;  %v255_v44 = vsel %vm254_vm3, %v248_v40, -inf }
 0x202   :  { %256 = vmax.xlane.f32.xlu0 %v255_v44 }
 0x203   :  { %v258_v45 = vsel %vm254_vm3, %v252_v43, -inf }
 0x206   :  { %259 = vmax.xlane.f32.xlu0 %v258_v45 }
 0x28f   :  { %v257_v46 = vpop.xlane.xlu0 %256 }
 0x290   :  { %v261_v47 = vsub.f32 %v248_v40, %v257_v46 }
 0x292   :  { %v263_v48 = vmul.f32 1.442695, %v261_v47 }
 0x293   :  { %v260_v49 = vpop.xlane.xlu0 %259 }
 0x294   :  { %356 = vpow2.f32 %v263_v48  ;;  %v262_v50 = vsub.f32 %v252_v43, %v260_v49 }
 0x296   :  { %v265_v51 = vmul.f32 1.442695, %v262_v50 }
 0x298   :  { %358 = vpow2.f32 %v265_v51 }
 0x29e   :  { %v357_v53 = vpop.eup %356 }
 0x29f   :  { %v267_v54 = vsel %vm254_vm3, %v357_v53, 0.0  ;;  %v280_v55 = vmul.f32 %v357_v53, %v316_v52 }
 0x2a0   :  { %268 = vadd.xlane.f32.xlu0 %v267_v54 }
 0x2a1   :  { %v282_v56 = vsel %vm254_vm3, %v280_v55, 0.0 }
 0x2a2   :  { %v359_v57 = vpop.eup %358  ;;  %283 = vadd.xlane.f32.xlu1 %v282_v56 }
 0x2a3   :  { %v281_v58 = vmul.f32 %v359_v57, %v316_v52  ;;  %v270_v60 = vsel %vm254_vm3, %v359_v57, 0.0 }
 0x2a5   :  { %v285_v59 = vsel %vm254_vm3, %v281_v58, 0.0 }
 0x2a6   :  { %286 = vadd.xlane.f32.xlu1 %v285_v59 }
 0x2aa   :  { %271 = vadd.xlane.f32.xlu1 %v270_v60 }
 0x32d   :  { %v269_v2 = vpop.xlane.xlu0 %268 }
 0x32f   :  { %v284_v61 = vpop.xlane.xlu1 %283 }
 0x330   :  { %360 = vrcp.f32 %v284_v61 }
 0x333   :  { %v287_v63 = vpop.xlane.xlu1 %286 }
 0x334   :  { %362 = vrcp.f32 %v287_v63 }
 0x337   :  { %v272_v7 = vpop.xlane.xlu1 %271 }
 0x33a   :  { %v361_v1 = vpop.eup %360 }
 0x33b   :  { %v290_v4 = vmul.f32 %v361_v1, %v269_v2 }
 0x33d   :  { %v292_v5 = vmul.f32 %v290_v4, %v246_v3 }
 0x33e   :  { %v363_v6 = vpop.eup %362 }
 0x33f   :  { %v291_v9 = vmul.f32 %v363_v6, %v272_v7  ;;  %295 = vst.msk [vmem:[%s542_s6] sm:$0xff] %vm294_vm4, %v292_v5 }
 0x341   :  { %v293_v10 = vmul.f32 %v291_v9, %v250_v8 }
 0x343   :  { %296 = vst.msk [vmem:[%s542_s6 + $0x8] sm:$0xff] %vm294_vm4, %v293_v10 }
 0x344   :  { %301 = vsyncpa [#allocation3], 1 }
 0x345   :  { %302 = vsyncpa [#allocation5], 1 }

</bundles_post_ra>
